<compile_context>
chip_gen: v6e
topology: v6e:2x2x1
jax: 0.10.0
libtpu: 0.0.40
codegen_flags: <defaults>
</compile_context>

<pallas_src>
import numpy as np
import jax
import jax.numpy as jnp
from jax.experimental import pallas as pl
from jax.experimental.pallas import tpu as pltpu

_VMEM_LIMIT = 32 * 1024 * 1024  # bytes; >= v6e/v7x default, raises v5e's 16 MiB default


def _round_up(x, m):
    return ((x + m - 1) // m) * m


def _pick_chunk(T, max_chunk=32):
    """Largest divisor of T that is <= max_chunk (timesteps per grid step)."""
    best = 1
    for d in range(1, min(T, max_chunk) + 1):
        if T % d == 0:
            best = d
    return best


# ----------------------------- Pallas kernels ------------------------------

def proj_kernel(x_ref, w_ref, b_ref, o_ref):
    """Hoisted input projection: o = x @ W_ih^T + (b_ih + b_hh).

    x_ref: (tm, Din)   w_ref: (Din, 4*Hp)   b_ref: (1, 4*Hp)   o_ref: (tm, 4*Hp)
    """
    o_ref[...] = (jnp.dot(x_ref[...], w_ref[...],
                          preferred_element_type=jnp.float32)
                  + b_ref[...]).astype(o_ref.dtype)


def _lstm_chunk(zx_ref, whh_ref, h_sc, c_sc, yseq_ref=None):
    """Run TC recurrent steps on the current chunk. Returns the final hidden state.

    zx_ref : (TC, Bp, 4*Hp)  precomputed x-projection (+ bias) for this chunk
    whh_ref: (Hp, 4*Hp)      W_hh^T, resident in VMEM scratch
    h_sc   : (Bp, Hp)        recurrent hidden state (persists across grid steps)
    c_sc   : (Bp, Hp)        recurrent cell state
    yseq_ref: optional (TC, Bp, Hp) output hidden sequence
    """
    Hp = h_sc.shape[-1]
    TC = zx_ref.shape[0]

    def step(s, carry):
        h, c = carry
        z = zx_ref[s] + jnp.dot(h, whh_ref[...],
                                preferred_element_type=jnp.float32)
        i = jax.nn.sigmoid(z[:, 0 * Hp:1 * Hp])
        f = jax.nn.sigmoid(z[:, 1 * Hp:2 * Hp])
        g = jnp.tanh(z[:, 2 * Hp:3 * Hp])
        o = jax.nn.sigmoid(z[:, 3 * Hp:4 * Hp])
        c_new = f * c + i * g
        h_new = o * jnp.tanh(c_new)
        if yseq_ref is not None:
            yseq_ref[s] = h_new.astype(yseq_ref.dtype)
        return h_new, c_new

    h_fin, c_fin = jax.lax.fori_loop(0, TC, step, (h_sc[...], c_sc[...]),
                                     unroll=True)
    h_sc[...] = h_fin
    c_sc[...] = c_fin
    return h_fin


def lstm_seq_kernel(zx_ref, whh_hbm, yseq_ref, h_sc, c_sc, whh_vmem):
    """Non-final LSTM layer: emits the hidden sequence for the next layer."""
    chunk = pl.program_id(0)

    @pl.when(chunk == 0)
    def _():
        h_sc[...] = jnp.zeros_like(h_sc)
        c_sc[...] = jnp.zeros_like(c_sc)
        # Stage W_hh^T into VMEM once (single copy, no double buffering).
        pltpu.sync_copy(whh_hbm, whh_vmem)

    _lstm_chunk(zx_ref, whh_vmem, h_sc, c_sc, yseq_ref)


def lstm_last_kernel(zx_ref, whh_hbm, fcw_ref, fcb_ref, out_ref,
                     h_sc, c_sc, whh_vmem):
    """Final LSTM layer fused with the fc head; no hidden-sequence output."""
    chunk = pl.program_id(0)

    @pl.when(chunk == 0)
    def _():
        h_sc[...] = jnp.zeros_like(h_sc)
        c_sc[...] = jnp.zeros_like(c_sc)
        pltpu.sync_copy(whh_hbm, whh_vmem)

    h_fin = _lstm_chunk(zx_ref, whh_vmem, h_sc, c_sc, None)

    @pl.when(chunk == pl.num_programs(0) - 1)
    def _():
        out_ref[...] = (jnp.dot(h_fin, fcw_ref[...],
                                preferred_element_type=jnp.float32)
                        + fcb_ref[...]).astype(out_ref.dtype)


# ------------------------------ wrappers ------------------------------------

def input_projection(x2d, wih_t, bias, row_tile):
    """(M, Din) @ (Din, 4*Hp) + bias, tiled over rows (parallel grid axis)."""
    M, Din = x2d.shape
    F = wih_t.shape[1]
    return pl.pallas_call(
        proj_kernel,
        out_shape=jax.ShapeDtypeStruct((M, F), jnp.float32),
        grid_spec=pltpu.PrefetchScalarGridSpec(
            num_scalar_prefetch=0,
            grid=(M // row_tile,),
            in_specs=[pl.BlockSpec((row_tile, Din), lambda i: (i, 0)),
                      pl.BlockSpec((Din, F), lambda i: (0, 0)),
                      pl.BlockSpec((1, F), lambda i: (0, 0))],
            out_specs=pl.BlockSpec((row_tile, F), lambda i: (i, 0))),
        compiler_params=pltpu.CompilerParams(
            dimension_semantics=("parallel",),
            vmem_limit_bytes=_VMEM_LIMIT),
    )(x2d, wih_t, bias)


def lstm_layer_seq(zx, whh_t, time_chunk):
    """zx: (T, Bp, 4*Hp) precomputed projection. Returns yseq (T, Bp, Hp)."""
    T, Bp, F = zx.shape
    Hp = F // 4
    return pl.pallas_call(
        lstm_seq_kernel,
        out_shape=jax.ShapeDtypeStruct((T, Bp, Hp), jnp.float32),
        grid_spec=pltpu.PrefetchScalarGridSpec(
            num_scalar_prefetch=0,
            grid=(T // time_chunk,),
            in_specs=[pl.BlockSpec((time_chunk, Bp, F), lambda c: (c, 0, 0)),
                      pl.BlockSpec(memory_space=pl.ANY)],
            out_specs=pl.BlockSpec((time_chunk, Bp, Hp), lambda c: (c, 0, 0)),
            scratch_shapes=[pltpu.VMEM((Bp, Hp), jnp.float32),
                            pltpu.VMEM((Bp, Hp), jnp.float32),
                            pltpu.VMEM((Hp, F), jnp.float32)]),
        compiler_params=pltpu.CompilerParams(
            dimension_semantics=("arbitrary",),
            vmem_limit_bytes=_VMEM_LIMIT),
    )(zx, whh_t)


def lstm_layer_last(zx, whh_t, fc_w_t, fc_b, time_chunk):
    """Final LSTM layer + fused fc. Returns (Bp, Cp) logits (padded)."""
    T, Bp, F = zx.shape
    Hp = F // 4
    Cp = fc_w_t.shape[1]
    return pl.pallas_call(
        lstm_last_kernel,
        out_shape=jax.ShapeDtypeStruct((Bp, Cp), jnp.float32),
        grid_spec=pltpu.PrefetchScalarGridSpec(
            num_scalar_prefetch=0,
            grid=(T // time_chunk,),
            in_specs=[pl.BlockSpec((time_chunk, Bp, F), lambda c: (c, 0, 0)),
                      pl.BlockSpec(memory_space=pl.ANY),
                      pl.BlockSpec((Hp, Cp), lambda c: (0, 0)),
                      pl.BlockSpec((1, Cp), lambda c: (0, 0))],
            out_specs=pl.BlockSpec((Bp, Cp), lambda c: (0, 0)),
            scratch_shapes=[pltpu.VMEM((Bp, Hp), jnp.float32),
                            pltpu.VMEM((Bp, Hp), jnp.float32),
                            pltpu.VMEM((Hp, F), jnp.float32)]),
        compiler_params=pltpu.CompilerParams(
            dimension_semantics=("arbitrary",),
            vmem_limit_bytes=_VMEM_LIMIT),
    )(zx, whh_t, fc_w_t, fc_b)


def valstm_forward(x, params):
    """x: (B, T, input_size) batch_first, like the PyTorch module."""
    B, T, _ = x.shape
    num_classes = params["cfg"]["num_classes"]
    Bp = _round_up(B, 8)
    TC = _pick_chunk(T)

    # time-major + batch padding (padded rows are zeros; sliced away at the end)
    xt = jnp.transpose(x, (1, 0, 2))                       # (T, B, Din)
    xt = jnp.pad(xt, ((0, 0), (0, Bp - B), (0, 0)))        # (T, Bp, Din)
    seq2d = xt.reshape(T * Bp, xt.shape[-1])

    n_layers = len(params["lstm"])
    out_p = None
    for l, layer in enumerate(params["lstm"]):
        # (1) hoisted input projection: one large matmul over all T*Bp rows
        zx2d = input_projection(seq2d, layer["wih_t"], layer["bias"],
                                row_tile=TC * Bp)
        F = zx2d.shape[1]
        zx = zx2d.reshape(T, Bp, F)
        if l < n_layers - 1:
            yseq = lstm_layer_seq(zx, layer["whh_t"], TC)  # (T, Bp, Hp)
            seq2d = yseq.reshape(T * Bp, F // 4)
        else:
            out_p = lstm_layer_last(zx, layer["whh_t"],
                                    params["fc_w_t"], params["fc_b"], TC)
    return out_p[:B, :num_classes]


# ------------------------- deterministic parameters --------------------------

def make_params(key, input_size, hidden_size, num_layers, num_classes):
    """Orthogonal W_ih / W_hh, zero LSTM biases, orthogonal fc.weight, fc.bias = 0.1
    (matches VALSTM._initialize). Builds zero-padded, gate-blocked, transposed
    kernel weights and keeps the raw weights for the pure-JAX reference."""
    H = hidden_size
    Hp = _round_up(H, 128)
    Cp = _round_up(num_classes, 128)
    ortho = jax.nn.initializers.orthogonal()

    def gate_pad_t(w, d_in, d_in_pad):
        # w: (4H, d_in) -> (d_in_pad, 4*Hp), gates [i|f|g|o] at column offsets g*Hp.
        wt = jnp.zeros((d_in_pad, 4 * Hp), jnp.float32)
        for g in range(4):
            wt = wt.at[:d_in, g * Hp:g * Hp + H].set(w[g * H:(g + 1) * H, :].T)
        return wt

    def gate_pad_b(b):
        bp = jnp.zeros((1, 4 * Hp), jnp.float32)
        for g in range(4):
            bp = bp.at[0, g * Hp:g * Hp + H].set(b[g * H:(g + 1) * H])
        return bp

    layers, raw_layers = [], []
    for l in range(num_layers):
        d_in = input_size if l == 0 else H
        d_in_pad = input_size if l == 0 else Hp
        key, k1, k2 = jax.random.split(key, 3)
        w_ih = ortho(k1, (4 * H, d_in), jnp.float32)
        w_hh = ortho(k2, (4 * H, H), jnp.float32)
        b = jnp.zeros((4 * H,), jnp.float32)               # b_ih + b_hh = 0
        raw_layers.append((w_ih, w_hh, b))
        layers.append(dict(
            wih_t=gate_pad_t(w_ih, d_in, d_in_pad),        # (d_in[_pad], 4*Hp)
            whh_t=gate_pad_t(w_hh, H, Hp),                 # (Hp, 4*Hp)
            bias=gate_pad_b(b),                            # (1, 4*Hp)
        ))

    key, kf = jax.random.split(key)
    fc_w = ortho(kf, (num_classes, H), jnp.float32)
    fc_b = jnp.full((num_classes,), 0.1, jnp.float32)
    fc_w_t = jnp.zeros((Hp, Cp), jnp.float32).at[:H, :num_classes].set(fc_w.T)
    fc_b_p = jnp.zeros((1, Cp), jnp.float32).at[0, :num_classes].set(fc_b)

    return dict(
        lstm=layers, fc_w_t=fc_w_t, fc_b=fc_b_p,
        raw=dict(layers=raw_layers, fc_w=fc_w, fc_b=fc_b),
        cfg=dict(hidden_size=H, num_classes=num_classes, Hp=Hp, Cp=Cp),
    )


# --------------------------- pure-JAX reference ------------------------------

def ref_forward(x, params):
    raw = params["raw"]
    H = params["cfg"]["hidden_size"]
    B = x.shape[0]
    seq = jnp.transpose(x, (1, 0, 2))
    h = None
    for (w_ih, w_hh, b) in raw["layers"]:
        wih_t, whh_t = w_ih.T, w_hh.T

        def step(carry, x_t, wih_t=wih_t, whh_t=whh_t, b=b):
            h, c = carry
            z = x_t @ wih_t + h @ whh_t + b
            i = jax.nn.sigmoid(z[:, :H])
            f = jax.nn.sigmoid(z[:, H:2 * H])
            g = jnp.tanh(z[:, 2 * H:3 * H])
            o = jax.nn.sigmoid(z[:, 3 * H:4 * H])
            c = f * c + i * g
            h = o * jnp.tanh(c)
            return (h, c), h

        (h, _), seq = jax.lax.scan(
            step, (jnp.zeros((B, H)), jnp.zeros((B, H))), seq)
    return h @ raw["fc_w"].T + raw["fc_b"]


# ----------------------------------- main ------------------------------------

if __name__ == "__main__":
    B, T = 2, 8
    input_size, hidden_size, num_layers, num_classes = 16, 32, 2, 4

    key = jax.random.PRNGKey(0)
    kx, kp = jax.random.split(key)
    x = jax.random.normal(kx, (B, T, input_size), jnp.float32)
    params = make_params(kp, input_size, hidden_size, num_layers, num_classes)

    out = valstm_forward(x, params)
    out = jax.block_until_ready(out)

    ref = ref_forward(x, params)
    np.testing.assert_allclose(np.asarray(out), np.asarray(ref),
                               rtol=1e-4, atol=1e-4)
    assert out.shape == (B, num_classes)
    print("KERNEL_OK")
</pallas_src>

<mosaic_0001>
module attributes {stable_mosaic.version = 11 : i64} {
  func.func @proj_kernel(%arg0: i32, %arg1: memref<64x16xf32, #tpu.memory_space<vmem>>, %arg2: memref<16x512xf32, #tpu.memory_space<vmem>>, %arg3: memref<1x512xf32, #tpu.memory_space<vmem>>, %arg4: memref<64x512xf32, #tpu.memory_space<vmem>>) attributes {dimension_semantics = [#tpu.dimension_semantics<parallel>], iteration_bounds = array<i64: 1>, scalar_prefetch = 0 : i64, scratch_operands = 0 : i64, tpu.core_type = #tpu.core_type<tc>, window_params = [{transform_indices = @transform_0, window_bounds = array<i64: 64, 16>}, {pipeline_mode = #tpu.pipeline_mode<synchronous>, transform_indices = @transform_1, window_bounds = array<i64: 16, 512>}, {pipeline_mode = #tpu.pipeline_mode<synchronous>, transform_indices = @transform_2, window_bounds = array<i64: 1, 512>}, {transform_indices = @transform_3, window_bounds = array<i64: 64, 512>}]} {
    %c0 = arith.constant 0 : index
    %c0_0 = arith.constant 0 : index
    %0 = vector.load %arg1[%c0, %c0_0] : memref<64x16xf32, #tpu.memory_space<vmem>>, vector<64x16xf32>
    %c0_1 = arith.constant 0 : index
    %c0_2 = arith.constant 0 : index
    %1 = vector.load %arg2[%c0_1, %c0_2] : memref<16x512xf32, #tpu.memory_space<vmem>>, vector<16x512xf32>
    %cst = arith.constant dense<0.000000e+00> : vector<64x512xf32>
    %2 = tpu.matmul %0, %1, %cst {dimension_numbers = #tpu.dot_dimension_numbers<[1], [0], [0], [1], [0, 0, 1, 1], [], []>} : vector<64x16xf32>, vector<16x512xf32>, vector<64x512xf32> -> vector<64x512xf32>
    %c0_3 = arith.constant 0 : index
    %c0_4 = arith.constant 0 : index
    %3 = vector.load %arg3[%c0_3, %c0_4] : memref<1x512xf32, #tpu.memory_space<vmem>>, vector<1x512xf32>
    %4 = vector.broadcast %3 : vector<1x512xf32> to vector<64x512xf32>
    %5 = arith.addf %2, %4 : vector<64x512xf32>
    %c0_5 = arith.constant 0 : index
    %c0_6 = arith.constant 0 : index
    %6 = vector.load %arg4[%c0_5, %c0_6] : memref<64x512xf32, #tpu.memory_space<vmem>>, vector<64x512xf32>
    tpu.vector_store %arg4[%c0_5, %c0_6], %5 {strides = array<i32>} : memref<64x512xf32, #tpu.memory_space<vmem>>, vector<64x512xf32>,
    return
  }
  func.func @transform_0(%arg0: i32) -> (i32, i32) {
    %c0_i32 = arith.constant 0 : i32
    %c0_i32_0 = arith.constant 0 : i32
    return %arg0, %c0_i32 : i32, i32
  }
  func.func @transform_1(%arg0: i32) -> (i32, i32) {
    %c0_i32 = arith.constant 0 : i32
    %c0_i32_0 = arith.constant 0 : i32
    %c0_i32_1 = arith.constant 0 : i32
    return %c0_i32, %c0_i32_0 : i32, i32
  }
  func.func @transform_2(%arg0: i32) -> (i32, i32) {
    %c0_i32 = arith.constant 0 : i32
    %c0_i32_0 = arith.constant 0 : i32
    %c0_i32_1 = arith.constant 0 : i32
    return %c0_i32, %c0_i32_0 : i32, i32
  }
  func.func @transform_3(%arg0: i32) -> (i32, i32) {
    %c0_i32 = arith.constant 0 : i32
    %c0_i32_0 = arith.constant 0 : i32
    return %arg0, %c0_i32 : i32, i32
  }
}

</mosaic_0001>

<bundles_post_ra>
// kernel: tpu_custom_call.1
= control target key start
LH: loop header
LB: loop body
LE: loop exit
PB: predicated region body
PF: predicated region fallthrough
CT: control target
= control target key end

     0   :  { %vm53_vm0 = vcmask 130048   ;;  %v394_v9 = vmov 0.0   ;;  %s528_s0 = inlined_call_operand.vmem [shape: f32[64,16], index: 0, kind: input, shape index: {}]   ;;  %s529_s1 = inlined_call_operand.vmem [shape: f32[16,512], index: 1, kind: input, shape index: {}]   ;;  %s530_s2 = inlined_call_operand.vmem [shape: f32[1,512], index: 2, kind: input, shape index: {}]   ;;  %s531_s3 = inlined_call_operand.hbm [shape: f32[64,512], index: 3, kind: output, shape index: {}]  }
   0x1   :  { %v28_v0 = vld [vmem:[%s529_s1 + $0x28] sm:$0xff]  ;;  %v30_v1 = vld [vmem:[%s529_s1 + $0x38] sm:$0xff]  ;;  %v27_v2 = vld [vmem:[%s529_s1 + $0x20] sm:$0xff]  ;;  %142 = vmatprep.mubr.f32.mxu0 %v394_v9  ;;  %255 = vmatprep.mubr.f32.mxu1 %v394_v9 }
   0x2   :  { %106 = vmatprep.subr.mxu0 %v28_v0  ;;  %219 = vmatprep.subr.mxu1 %v30_v1  ;;  %v29_v3 = vld [vmem:[%s529_s1 + $0x30] sm:$0xff]  ;;  %v24_v4 = vld [vmem:[%s529_s1 + $0x8] sm:$0xff]  ;;  %v26_v5 = vld [vmem:[%s529_s1 + $0x18] sm:$0xff] }
   0x3   :  { %107 = vmatpush1.msra.mxu0 %v27_v2  ;;  %220 = vmatpush1.msra.mxu1 %v29_v3  ;;  %v23_v6 = vld [vmem:[%s529_s1] sm:$0xff]  ;;  %v25_v7 = vld [vmem:[%s529_s1 + $0x10] sm:$0xff] }
   0x4   :  { %108 = vmatprep.subr.mxu0 %v24_v4  ;;  %221 = vmatprep.subr.mxu1 %v26_v5  ;;  %v15_v8 = vld [vmem:[%s528_s0] sm:$0xff] }
   0x5   :  { %109 = vmatpush1.msra.mxu0 %v23_v6  ;;  %222 = vmatpush1.msra.mxu1 %v25_v7 }
   0x6   :  { %8 = vsyncpa [#allocation3], 0  ;;  %352 = vmatmul.mubr.msk.f32.vlgmr.msra.gmra.mxu0 %vm53_vm0, %v15_v8  ;;  %360 = vmatmul.mubr.msk.f32.vlgmr.msra.gmra.mxu1 %vm53_vm0, %v15_v8  ;;  %v16_v10 = vld [vmem:[%s528_s0 + $0x8] sm:$0xff]  ;;  %v17_v11 = vld [vmem:[%s528_s0 + $0x10] sm:$0xff]  ;;  %v33_v17 = vlaneseq }
   0x7   :  { %148 = vmatprep.mubr.f32.mxu0 %v394_v9  ;;  %261 = vmatprep.mubr.f32.mxu1 %v394_v9  ;;  %v18_v12 = vld [vmem:[%s528_s0 + $0x18] sm:$0xff]  ;;  %v19_v13 = vld [vmem:[%s528_s0 + $0x20] sm:$0xff]  ;;  %v20_v14 = vld [vmem:[%s528_s0 + $0x28] sm:$0xff] }
   0x8   :  { %v21_v15 = vld [vmem:[%s528_s0 + $0x30] sm:$0xff]  ;;  %v22_v16 = vld [vmem:[%s528_s0 + $0x38] sm:$0xff]  ;;  %v34_v18 = vshrl.u32 %v33_v17, 7  ;;  %v31_v21 = vld [vmem:[%s530_s2] sm:$0xf]  ;;  %s395_s0 = smov [#allocation2]  }
   0x9   :  { %s341_s2 = sshll.u32 %s395_s0, 4  ;;  %s342_s2 = int_to_ptr.vmem [resolvable:$true] %s341_s2 }
   0xa   :  { %353 = vmatmul.mubr.msk.f32.gmra.mxu0 %vm53_vm0, %v16_v10  ;;  %361 = vmatmul.mubr.msk.f32.gmra.mxu1 %vm53_vm0, %v16_v10  ;;  %v35_v19 = vsub.s32 0, %v34_v18  ;;  %v43_v20 = vsub.s32 2, %v34_v18  ;;  %v39_v22 = vsub.s32 1, %v34_v18  ;;  %v47_v23 = vsub.s32 3, %v34_v18  ;;  %s372_s18 = scalar_lea.vmem %s342_s2, 4096  ;;  %p377_p1 = scmp.lt.s32.totalorder %s342_s2, %s342_s2 }
   0xb   :  { %154 = vmatprep.mubr.f32.mxu0 %v394_v9  ;;  %267 = vmatprep.mubr.f32.mxu1 %v394_v9  ;;  %p373_p0 = scmp.ne.s32.totalorder %s342_s2, %s372_s18  ;;  %p378_p2 = scmp.lt.s32.totalorder %s372_s18, %s372_s18 }
   0xc   :  { %v485_v24 = vrot.slane %v31_v21, %v35_v19  ;;  %v487_v25 = vrot.slane %v31_v21, %v43_v20  ;;  %v489_v26 = vrot.slane %v31_v21, %v39_v22  ;;  %v491_v27 = vrot.slane %v31_v21, %v47_v23 }
   0xd   :  { %p379_p3 = por %p378_p2, %p377_p1 }
   0xe   :  { %354 = vmatmul.mubr.msk.f32.gmra.mxu0 %vm53_vm0, %v17_v11  ;;  %362 = vmatmul.mubr.msk.f32.gmra.mxu1 %vm53_vm0, %v17_v11 }
   0xf   :  { %160 = vmatprep.mubr.f32.mxu0 %v394_v9  ;;  %273 = vmatprep.mubr.f32.mxu1 %v394_v9  ;;  %p380_p4 = pnand %p379_p3, %p373_p0 }
  0x12   :  { %355 = vmatmul.mubr.msk.f32.gmra.mxu0 %vm53_vm0, %v18_v12  ;;  %363 = vmatmul.mubr.msk.f32.gmra.mxu1 %vm53_vm0, %v18_v12 }
  0x13   :  { %166 = vmatprep.mubr.f32.mxu0 %v394_v9  ;;  %279 = vmatprep.mubr.f32.mxu1 %v394_v9 }
  0x16   :  { %356 = vmatmul.mubr.msk.f32.gmra.mxu0 %vm53_vm0, %v19_v13  ;;  %364 = vmatmul.mubr.msk.f32.gmra.mxu1 %vm53_vm0, %v19_v13 }
  0x17   :  { %172 = vmatprep.mubr.f32.mxu0 %v394_v9  ;;  %285 = vmatprep.mubr.f32.mxu1 %v394_v9 }
  0x1a   :  { %357 = vmatmul.mubr.msk.f32.gmra.mxu0 %vm53_vm0, %v20_v14  ;;  %365 = vmatmul.mubr.msk.f32.gmra.mxu1 %vm53_vm0, %v20_v14 }
  0x1b   :  { %178 = vmatprep.mubr.f32.mxu0 %v394_v9  ;;  %291 = vmatprep.mubr.f32.mxu1 %v394_v9 }
  0x1e   :  { %358 = vmatmul.mubr.msk.f32.gmra.mxu0 %vm53_vm0, %v21_v15  ;;  %366 = vmatmul.mubr.msk.f32.gmra.mxu1 %vm53_vm0, %v21_v15 }
  0x1f   :  { %184 = vmatprep.mubr.f32.mxu0 %v394_v9  ;;  %297 = vmatprep.mubr.f32.mxu1 %v394_v9 }
  0x22   :  { %359 = vmatmul.mubr.msk.f32.gmra.mxu0 %vm53_vm0, %v22_v16  ;;  %367 = vmatmul.mubr.msk.f32.gmra.mxu1 %vm53_vm0, %v22_v16 }
  0xc6   :  { %v144_v28 = vpop.f32.mrf.mxu0  ;;  %v257_v29 = vpop.f32.mrf.mxu1 }
  0xc7   :  { %v145_v30 = vadd.f32 %v144_v28, %v485_v24  ;;  %v258_v31 = vadd.f32 %v257_v29, %v487_v25 }
  0xc8   :  { %v146_v32 = vpop.f32.mrf.mxu0  ;;  %v259_v33 = vpop.f32.mrf.mxu1 }
  0xc9   :  { %304 = vst [vmem:[#allocation2] sm:$0xff] %v145_v30  ;;  %306 = vst [vmem:[#allocation2 + $0x10] sm:$0xff] %v258_v31  ;;  %v147_v34 = vadd.f32 %v146_v32, %v489_v26  ;;  %v260_v35 = vadd.f32 %v259_v33, %v491_v27 }
  0xca   :  { %v150_v36 = vpop.f32.mrf.mxu0  ;;  %v263_v37 = vpop.f32.mrf.mxu1 }
  0xcb   :  { %305 = vst [vmem:[#allocation2 + $0x8] sm:$0xff] %v147_v34  ;;  %307 = vst [vmem:[#allocation2 + $0x18] sm:$0xff] %v260_v35  ;;  %v151_v38 = vadd.f32 %v150_v36, %v485_v24  ;;  %v264_v39 = vadd.f32 %v263_v37, %v487_v25 }
  0xcc   :  { %v152_v40 = vpop.f32.mrf.mxu0  ;;  %v265_v41 = vpop.f32.mrf.mxu1 }
  0xcd   :  { %308 = vst [vmem:[#allocation2 + $0x20] sm:$0xff] %v151_v38  ;;  %310 = vst [vmem:[#allocation2 + $0x30] sm:$0xff] %v264_v39  ;;  %v153_v42 = vadd.f32 %v152_v40, %v489_v26  ;;  %v266_v43 = vadd.f32 %v265_v41, %v491_v27 }
  0xce   :  { %v156_v44 = vpop.f32.mrf.mxu0  ;;  %v269_v45 = vpop.f32.mrf.mxu1 }
  0xcf   :  { %309 = vst [vmem:[#allocation2 + $0x28] sm:$0xff] %v153_v42  ;;  %311 = vst [vmem:[#allocation2 + $0x38] sm:$0xff] %v266_v43  ;;  %v157_v46 = vadd.f32 %v156_v44, %v485_v24  ;;  %v270_v47 = vadd.f32 %v269_v45, %v487_v25 }
  0xd0   :  { %v158_v48 = vpop.f32.mrf.mxu0  ;;  %v271_v49 = vpop.f32.mrf.mxu1 }
  0xd1   :  { %312 = vst [vmem:[#allocation2 + $0x40] sm:$0xff] %v157_v46  ;;  %314 = vst [vmem:[#allocation2 + $0x50] sm:$0xff] %v270_v47  ;;  %v159_v50 = vadd.f32 %v158_v48, %v489_v26  ;;  %v272_v51 = vadd.f32 %v271_v49, %v491_v27 }
  0xd2   :  { %v162_v52 = vpop.f32.mrf.mxu0  ;;  %v275_v53 = vpop.f32.mrf.mxu1 }
  0xd3   :  { %313 = vst [vmem:[#allocation2 + $0x48] sm:$0xff] %v159_v50  ;;  %315 = vst [vmem:[#allocation2 + $0x58] sm:$0xff] %v272_v51  ;;  %v163_v54 = vadd.f32 %v162_v52, %v485_v24  ;;  %v276_v55 = vadd.f32 %v275_v53, %v487_v25 }
  0xd4   :  { %v164_v56 = vpop.f32.mrf.mxu0  ;;  %v277_v57 = vpop.f32.mrf.mxu1 }
  0xd5   :  { %316 = vst [vmem:[#allocation2 + $0x60] sm:$0xff] %v163_v54  ;;  %318 = vst [vmem:[#allocation2 + $0x70] sm:$0xff] %v276_v55  ;;  %v165_v58 = vadd.f32 %v164_v56, %v489_v26  ;;  %v278_v59 = vadd.f32 %v277_v57, %v491_v27 }
  0xd6   :  { %v168_v60 = vpop.f32.mrf.mxu0  ;;  %v281_v61 = vpop.f32.mrf.mxu1 }
  0xd7   :  { %317 = vst [vmem:[#allocation2 + $0x68] sm:$0xff] %v165_v58  ;;  %319 = vst [vmem:[#allocation2 + $0x78] sm:$0xff] %v278_v59  ;;  %v169_v62 = vadd.f32 %v168_v60, %v485_v24  ;;  %v282_v63 = vadd.f32 %v281_v61, %v487_v25 }
  0xd8   :  { %v170_v0 = vpop.f32.mrf.mxu0  ;;  %v283_v1 = vpop.f32.mrf.mxu1 }
  0xd9   :  { %320 = vst [vmem:[#allocation2 + $0x80] sm:$0xff] %v169_v62  ;;  %322 = vst [vmem:[#allocation2 + $0x90] sm:$0xff] %v282_v63  ;;  %v171_v2 = vadd.f32 %v170_v0, %v489_v26  ;;  %v284_v3 = vadd.f32 %v283_v1, %v491_v27 }
  0xda   :  { %v174_v4 = vpop.f32.mrf.mxu0  ;;  %v287_v5 = vpop.f32.mrf.mxu1 }
  0xdb   :  { %321 = vst [vmem:[#allocation2 + $0x88] sm:$0xff] %v171_v2  ;;  %323 = vst [vmem:[#allocation2 + $0x98] sm:$0xff] %v284_v3  ;;  %v175_v6 = vadd.f32 %v174_v4, %v485_v24  ;;  %v288_v7 = vadd.f32 %v287_v5, %v487_v25 }
  0xdc   :  { %v176_v8 = vpop.f32.mrf.mxu0  ;;  %v289_v9 = vpop.f32.mrf.mxu1 }
  0xdd   :  { %324 = vst [vmem:[#allocation2 + $0xa0] sm:$0xff] %v175_v6  ;;  %326 = vst [vmem:[#allocation2 + $0xb0] sm:$0xff] %v288_v7  ;;  %v177_v10 = vadd.f32 %v176_v8, %v489_v26  ;;  %v290_v11 = vadd.f32 %v289_v9, %v491_v27 }
  0xde   :  { %v180_v12 = vpop.f32.mrf.mxu0  ;;  %v293_v13 = vpop.f32.mrf.mxu1 }
  0xdf   :  { %325 = vst [vmem:[#allocation2 + $0xa8] sm:$0xff] %v177_v10  ;;  %327 = vst [vmem:[#allocation2 + $0xb8] sm:$0xff] %v290_v11  ;;  %v181_v14 = vadd.f32 %v180_v12, %v485_v24  ;;  %v294_v15 = vadd.f32 %v293_v13, %v487_v25 }
  0xe0   :  { %v182_v16 = vpop.f32.mrf.mxu0  ;;  %v295_v17 = vpop.f32.mrf.mxu1 }
  0xe1   :  { %328 = vst [vmem:[#allocation2 + $0xc0] sm:$0xff] %v181_v14  ;;  %330 = vst [vmem:[#allocation2 + $0xd0] sm:$0xff] %v294_v15  ;;  %v183_v18 = vadd.f32 %v182_v16, %v489_v26  ;;  %v296_v19 = vadd.f32 %v295_v17, %v491_v27 }
  0xe2   :  { %v186_v20 = vpop.f32.mrf.mxu0  ;;  %v299_v21 = vpop.f32.mrf.mxu1 }
  0xe3   :  { %329 = vst [vmem:[#allocation2 + $0xc8] sm:$0xff] %v183_v18  ;;  %331 = vst [vmem:[#allocation2 + $0xd8] sm:$0xff] %v296_v19  ;;  %v187_v22 = vadd.f32 %v186_v20, %v485_v24  ;;  %v300_v23 = vadd.f32 %v299_v21, %v487_v25 }
  0xe4   :  { %v188_v28 = vpop.f32.mrf.mxu0  ;;  %v301_v29 = vpop.f32.mrf.mxu1 }
  0xe5   :  { %332 = vst [vmem:[#allocation2 + $0xe0] sm:$0xff] %v187_v22  ;;  %334 = vst [vmem:[#allocation2 + $0xf0] sm:$0xff] %v300_v23  ;;  %v189_v30 = vadd.f32 %v188_v28, %v489_v26  ;;  %v302_v31 = vadd.f32 %v301_v29, %v491_v27 }
  0xe7   :  { %333 = vst [vmem:[#allocation2 + $0xe8] sm:$0xff] %v189_v30  ;;  %335 = vst [vmem:[#allocation2 + $0xf8] sm:$0xff] %v302_v31 }
  0xe8   :  { %383 = shalt.err (!%p380_p4)
}
  0xe9   :  { %s396_s19 = smov 512   ;;  %s397_s20 = smov 32  }
  0xea   :  { %347 = dma.vmem_to_hbm [thread:$0]  %s342_s2, 4096, %s531_s3, [#allocation3], %s396_s19, %s396_s19, %s397_s20  }
  0xeb   :  { %392 = dma.done.wait [#allocation3], 4096  }
  0xec   :  { %393 = vsyncadd [#allocation3], 4294963200 }
  0xed   :  { %351 = vsyncpa [#allocation3], 1 }

</bundles_post_ra>
